<compile_context>
chip_gen: v7x
topology: tpu7x:2x2x1
jax: 0.10.0
libtpu: 0.0.40
codegen_flags: <defaults>
</compile_context>

<pallas_src>
import functools

import jax
import jax.numpy as jnp
from jax import lax
from jax.experimental import pallas as pl
from jax.experimental.pallas import tpu as pltpu


def _mask_avg_pool_kernel(feat_ref, mask_ref, out_ref, acc_ref, msum_ref, *, eps):
    # feat_ref: (NB, C, THW)  native dtype
    # mask_ref: (NB, 1, THW)  native (possibly integer) dtype
    # out_ref : (NB, 1, C)    float32
    # acc_ref : (NB, 1, C)    float32 scratch  (masked feature sum)
    # msum_ref: (NB, 1, 1)    float32 scratch  (mask sum)
    k = pl.program_id(1)

    @pl.when(k == 0)
    def _init():
        acc_ref[...] = jnp.zeros_like(acc_ref)
        msum_ref[...] = jnp.zeros_like(msum_ref)

    f = feat_ref[...]                                   # (NB, C, THW)
    m_f32 = mask_ref[...].astype(jnp.float32)           # (NB, 1, THW)

    # Masked spatial sum on the MXU: einsum('nks,ncs->nkc', m, f) -> (NB, 1, C)
    acc_ref[...] += lax.dot_general(
        m_f32.astype(f.dtype), f,
        dimension_numbers=(((2,), (2,)), ((0,), (0,))),
        preferred_element_type=jnp.float32,
    )
    msum_ref[...] += jnp.sum(m_f32, axis=-1, keepdims=True)   # (NB, 1, 1)

    @pl.when(k == pl.num_programs(1) - 1)
    def _finalize():
        # eps is added exactly once, here (not per HW tile).
        inv = pl.reciprocal(msum_ref[...] + eps, approx=False)    # (NB, 1, 1)
        out_ref[...] = (acc_ref[...] * inv).astype(out_ref.dtype)


def _largest_divisor_leq(n, cap):
    for d in range(min(n, cap), 0, -1):
        if n % d == 0:
            return d
    return 1


def _spatial_tile(hw, max_elems):
    """Largest multiple of 128 dividing hw that is <= max_elems (min 128);
    falls back to the full extent if hw is not a multiple of 128."""
    if hw % 128 != 0:
        return hw
    best = 128
    t = 128
    while t <= hw:
        if hw % t == 0 and t <= max_elems:
            best = t
        t += 128
    return best


def mask_average_pooling(feat, mask, eps=1.0):
    """feat: (N, C, H, W), mask: (N, 1, H, W) any dtype -> (N, C) float32."""
    assert mask.shape[1] == 1, "mask must have a single channel"
    N, C, H, W = feat.shape
    HW = H * W

    # Metadata-only reshapes; dtypes pass through untouched (all casting happens
    # inside the kernel, so no extra HBM copies are materialized host-side).
    feat_r = feat.reshape(N, C, HW)
    mask_r = mask.reshape(N, 1, HW)

    # Tile selection: keep the double-buffered feat block around <= 8 MiB so it
    # pipelines within scoped VMEM on v5e/v6e/v7x, lane-aligned (THW % 128 == 0).
    itemsize = jnp.dtype(feat.dtype).itemsize
    budget = 4 * 1024 * 1024                              # bytes per feat buffer
    nb_cap = max(1, budget // max(1, C * 128 * itemsize))
    NB = _largest_divisor_leq(N, min(8, nb_cap))
    max_thw = max(128, budget // max(1, NB * C * itemsize))
    THW = _spatial_tile(HW, max_thw)

    grid = (N // NB, HW // THW)            # batch axis first, HW reduction last

    kernel = functools.partial(_mask_avg_pool_kernel, eps=float(eps))

    out3 = pl.pallas_call(
        kernel,
        out_shape=jax.ShapeDtypeStruct((N, 1, C), jnp.float32),
        grid_spec=pltpu.PrefetchScalarGridSpec(
            num_scalar_prefetch=0,
            grid=grid,
            in_specs=[
                pl.BlockSpec((NB, C, THW), lambda b, k: (b, 0, k)),
                pl.BlockSpec((NB, 1, THW), lambda b, k: (b, 0, k)),
            ],
            out_specs=pl.BlockSpec((NB, 1, C), lambda b, k: (b, 0, 0)),
            scratch_shapes=[
                pltpu.VMEM((NB, 1, C), jnp.float32),
                pltpu.VMEM((NB, 1, 1), jnp.float32),
            ],
        ),
        compiler_params=pltpu.CompilerParams(
            dimension_semantics=("parallel", "arbitrary"),
            vmem_limit_bytes=32 * 1024 * 1024,
        ),
    )(feat_r, mask_r)

    # (N, 1, C) -> (N, C): metadata-only, done outside the kernel so the kernel
    # never needs an in-body relayout.
    return out3.reshape(N, C)


if __name__ == "__main__":
    key = jax.random.PRNGKey(0)
    kf, km = jax.random.split(key)

    N, C, H, W = 2, 4, 16, 16
    feat = jax.random.normal(kf, (N, C, H, W), dtype=jnp.float32)
    # Non-float mask to exercise the in-kernel cast path (PyTorch casts to float).
    mask = (jax.random.uniform(km, (N, 1, H, W)) > 0.5).astype(jnp.int32)

    out = mask_average_pooling(feat, mask, eps=1.0)
    out = jax.block_until_ready(out)

    # Pure-JAX reference check (silent).
    m_f = mask.astype(jnp.float32)
    ref = jnp.sum(feat * m_f, axis=(2, 3)) / (jnp.sum(m_f, axis=(2, 3)) + 1.0)
    assert out.shape == (N, C)
    assert jnp.allclose(out, ref, atol=1e-4, rtol=1e-4)

    print("KERNEL_OK")
</pallas_src>

<mosaic_0001>
module attributes {stable_mosaic.version = 11 : i64} {
  func.func @_mask_avg_pool_kernel(%arg0: i32, %arg1: i32, %arg2: memref<2x4x256xf32, #tpu.memory_space<vmem>>, %arg3: memref<2x1x256xi32, #tpu.memory_space<vmem>>, %arg4: memref<2x1x4xf32, #tpu.memory_space<vmem>>, %arg5: memref<2x1x4xf32, #tpu.memory_space<vmem>>, %arg6: memref<2x1x1xf32, #tpu.memory_space<vmem>>) attributes {dimension_semantics = [#tpu.dimension_semantics<parallel>, #tpu.dimension_semantics<arbitrary>], iteration_bounds = array<i64: 1, 1>, scalar_prefetch = 0 : i64, scratch_operands = 2 : i64, tpu.core_type = #tpu.core_type<tc>, window_params = [{transform_indices = @transform_0, window_bounds = array<i64: 2, 4, 256>}, {transform_indices = @transform_1, window_bounds = array<i64: 2, 1, 256>}, {transform_indices = @transform_2, window_bounds = array<i64: 2, 1, 4>}]} {
    %c0_i32 = arith.constant 0 : i32
    %0 = arith.cmpi eq, %arg1, %c0_i32 : i32
    %1 = arith.extui %0 : i1 to i32
    %c0_i32_0 = arith.constant 0 : i32
    %2 = arith.cmpi ne, %1, %c0_i32_0 : i32
    scf.if %2 {
      %cst_21 = arith.constant 0.000000e+00 : f32
      %18 = vector.broadcast %cst_21 : f32 to vector<2x1x4xf32>
      %c0_22 = arith.constant 0 : index
      %c0_23 = arith.constant 0 : index
      %c0_24 = arith.constant 0 : index
      %19 = vector.load %arg5[%c0_22, %c0_23, %c0_24] : memref<2x1x4xf32, #tpu.memory_space<vmem>>, vector<2x1x4xf32>
      tpu.vector_store %arg5[%c0_22, %c0_23, %c0_24], %18 {strides = array<i32>} : memref<2x1x4xf32, #tpu.memory_space<vmem>>, vector<2x1x4xf32>,
      %cst_25 = arith.constant 0.000000e+00 : f32
      %20 = vector.broadcast %cst_25 : f32 to vector<2x1x1xf32>
      %c0_26 = arith.constant 0 : index
      %c0_27 = arith.constant 0 : index
      %c0_28 = arith.constant 0 : index
      %21 = vector.load %arg6[%c0_26, %c0_27, %c0_28] : memref<2x1x1xf32, #tpu.memory_space<vmem>>, vector<2x1x1xf32>
      tpu.vector_store %arg6[%c0_26, %c0_27, %c0_28], %20 {strides = array<i32>} : memref<2x1x1xf32, #tpu.memory_space<vmem>>, vector<2x1x1xf32>,
    } else {
    }
    %c0 = arith.constant 0 : index
    %c0_1 = arith.constant 0 : index
    %c0_2 = arith.constant 0 : index
    %3 = vector.load %arg2[%c0, %c0_1, %c0_2] : memref<2x4x256xf32, #tpu.memory_space<vmem>>, vector<2x4x256xf32>
    %c0_3 = arith.constant 0 : index
    %c0_4 = arith.constant 0 : index
    %c0_5 = arith.constant 0 : index
    %4 = vector.load %arg3[%c0_3, %c0_4, %c0_5] : memref<2x1x256xi32, #tpu.memory_space<vmem>>, vector<2x1x256xi32>
    %5 = arith.sitofp %4 : vector<2x1x256xi32> to vector<2x1x256xf32>
    %c0_6 = arith.constant 0 : index
    %c0_7 = arith.constant 0 : index
    %c0_8 = arith.constant 0 : index
    %6 = vector.load %arg5[%c0_6, %c0_7, %c0_8] : memref<2x1x4xf32, #tpu.memory_space<vmem>>, vector<2x1x4xf32>
    %cst = arith.constant dense<0.000000e+00> : vector<2x1x4xf32>
    %7 = tpu.matmul %5, %3, %cst {dimension_numbers = #tpu.dot_dimension_numbers<[2], [2], [1], [1], [0, 0, 0, 1, 1, 1], [0], [0]>} : vector<2x1x256xf32>, vector<2x4x256xf32>, vector<2x1x4xf32> -> vector<2x1x4xf32>
    %8 = arith.addf %6, %7 : vector<2x1x4xf32>
    %c0_9 = arith.constant 0 : index
    %c0_10 = arith.constant 0 : index
    %c0_11 = arith.constant 0 : index
    %9 = vector.load %arg5[%c0_9, %c0_10, %c0_11] : memref<2x1x4xf32, #tpu.memory_space<vmem>>, vector<2x1x4xf32>
    tpu.vector_store %arg5[%c0_9, %c0_10, %c0_11], %8 {strides = array<i32>} : memref<2x1x4xf32, #tpu.memory_space<vmem>>, vector<2x1x4xf32>,
    %c0_12 = arith.constant 0 : index
    %c0_13 = arith.constant 0 : index
    %c0_14 = arith.constant 0 : index
    %10 = vector.load %arg6[%c0_12, %c0_13, %c0_14] : memref<2x1x1xf32, #tpu.memory_space<vmem>>, vector<2x1x1xf32>
    %cst_15 = arith.constant dense<0.000000e+00> : vector<2x1xf32>
    %11 = vector.multi_reduction <add>, %5, %cst_15 [2] : vector<2x1x256xf32> to vector<2x1xf32>
    %12 = vector.shape_cast %11 : vector<2x1xf32> to vector<2x1x1xf32>
    %13 = arith.addf %10, %12 : vector<2x1x1xf32>
    %c0_16 = arith.constant 0 : index
    %c0_17 = arith.constant 0 : index
    %c0_18 = arith.constant 0 : index
    %14 = vector.load %arg6[%c0_16, %c0_17, %c0_18] : memref<2x1x1xf32, #tpu.memory_space<vmem>>, vector<2x1x1xf32>
    tpu.vector_store %arg6[%c0_16, %c0_17, %c0_18], %13 {strides = array<i32>} : memref<2x1x1xf32, #tpu.memory_space<vmem>>, vector<2x1x1xf32>,
    %c0_i32_19 = arith.constant 0 : i32
    %15 = arith.cmpi eq, %arg1, %c0_i32_19 : i32
    %16 = arith.extui %15 : i1 to i32
    %c0_i32_20 = arith.constant 0 : i32
    %17 = arith.cmpi ne, %16, %c0_i32_20 : i32
    scf.if %17 {
      %c0_21 = arith.constant 0 : index
      %c0_22 = arith.constant 0 : index
      %c0_23 = arith.constant 0 : index
      %18 = vector.load %arg6[%c0_21, %c0_22, %c0_23] : memref<2x1x1xf32, #tpu.memory_space<vmem>>, vector<2x1x1xf32>
      %cst_24 = arith.constant 1.000000e+00 : f32
      %19 = vector.broadcast %cst_24 : f32 to vector<2x1x1xf32>
      %20 = arith.addf %18, %19 : vector<2x1x1xf32>
      %21 = tpu.reciprocal %20 : vector<2x1x1xf32> -> vector<2x1x1xf32>
      %c0_25 = arith.constant 0 : index
      %c0_26 = arith.constant 0 : index
      %c0_27 = arith.constant 0 : index
      %22 = vector.load %arg5[%c0_25, %c0_26, %c0_27] : memref<2x1x4xf32, #tpu.memory_space<vmem>>, vector<2x1x4xf32>
      %23 = vector.broadcast %21 : vector<2x1x1xf32> to vector<2x1x4xf32>
      %24 = arith.mulf %22, %23 : vector<2x1x4xf32>
      %c0_28 = arith.constant 0 : index
      %c0_29 = arith.constant 0 : index
      %c0_30 = arith.constant 0 : index
      %25 = vector.load %arg4[%c0_28, %c0_29, %c0_30] : memref<2x1x4xf32, #tpu.memory_space<vmem>>, vector<2x1x4xf32>
      tpu.vector_store %arg4[%c0_28, %c0_29, %c0_30], %24 {strides = array<i32>} : memref<2x1x4xf32, #tpu.memory_space<vmem>>, vector<2x1x4xf32>,
    } else {
    }
    return
  }
  func.func @transform_0(%arg0: i32, %arg1: i32) -> (i32, i32, i32) {
    %c0_i32 = arith.constant 0 : i32
    %c0_i32_0 = arith.constant 0 : i32
    return %arg0, %c0_i32, %arg1 : i32, i32, i32
  }
  func.func @transform_1(%arg0: i32, %arg1: i32) -> (i32, i32, i32) {
    %c0_i32 = arith.constant 0 : i32
    %c0_i32_0 = arith.constant 0 : i32
    return %arg0, %c0_i32, %arg1 : i32, i32, i32
  }
  func.func @transform_2(%arg0: i32, %arg1: i32) -> (i32, i32, i32) {
    %c0_i32 = arith.constant 0 : i32
    %c0_i32_0 = arith.constant 0 : i32
    %c0_i32_1 = arith.constant 0 : i32
    return %arg0, %c0_i32, %c0_i32_0 : i32, i32, i32
  }
}

</mosaic_0001>

<bundles_post_ra>
// kernel: tpu_custom_call.1
= control target key start
LH: loop header
LB: loop body
LE: loop exit
PB: predicated region body
PF: predicated region fallthrough
CT: control target
= control target key end

     0   :  { %7 = vsyncpa [#allocation5], 0  ;;  %s469_s0 = inlined_call_operand.hbm [shape: f32[2,4,256], index: 0, kind: input, shape index: {}]   ;;  %s470_s1 = inlined_call_operand.hbm [shape: s32[2,1,256], index: 1, kind: input, shape index: {}]   ;;  %s471_s2 = inlined_call_operand.hbm [shape: f32[2,1,4], index: 2, kind: output, shape index: {}]  }
   0x1   :  { %8 = vsyncpa [#allocation8], 0 }
   0x2   :  { %9 = vsyncpa [#allocation6], 0  ;;  %s391_s9 = smov [#allocation4]   ;;  %s319_s13 = scalar_lea.hbm %s469_s0, 256 }
   0x3   :  { %s15_s10 = sshll.u32 %s391_s9, 4  ;;  %p320_p0 = scmp.ne.s32.totalorder %s469_s0, %s319_s13  ;;  %s16_s10 = int_to_ptr.vmem [resolvable:$true] %s15_s10 }
   0x4   :  { %p323_p1 = scmp.lt.u32.totalorder %s319_s13, %s469_s0 }
   0x6   :  { %p325_p2 = pnand %p323_p1, %p320_p0 }
   0x8   :  { %328 = shalt.err (!%p325_p2)
}
   0x9   :  { %s329_s18 = scalar_lea.vmem %s16_s10, 256  ;;  %p334_p4 = scmp.lt.s32.totalorder %s16_s10, %s16_s10 }
   0xa   :  { %p330_p3 = scmp.ne.s32.totalorder %s16_s10, %s329_s18  ;;  %p335_p5 = scmp.lt.s32.totalorder %s329_s18, %s329_s18 }
   0xc   :  { %p336_p6 = por %p335_p5, %p334_p4 }
   0xe   :  { %p337_p7 = pnand %p336_p6, %p330_p3 }
  0x10   :  { %340 = shalt.err (!%p337_p7)
}
  0x11   :  { %s392_s19 = smov 128   ;;  %s393_s20 = smov 8  }
  0x12   :  { %21 = dma.hbm_to_vmem [thread:$0]  %s469_s0, 256, %s16_s10, [#allocation5], %s392_s19, %s392_s19, %s393_s20  }
  0x13   :  { %s394_s23 = smov [#allocation7]   ;;  %s341_s27 = scalar_lea.hbm %s470_s1, 64 }
  0x14   :  { %s27_s24 = sshll.u32 %s394_s23, 4  ;;  %p342_p8 = scmp.ne.s32.totalorder %s470_s1, %s341_s27  ;;  %s28_s24 = int_to_ptr.vmem [resolvable:$true] %s27_s24 }
  0x15   :  { %p345_p9 = scmp.lt.u32.totalorder %s341_s27, %s470_s1 }
  0x17   :  { %p347_p10 = pnand %p345_p9, %p342_p8 }
  0x19   :  { %350 = shalt.err (!%p347_p10)
}
  0x1a   :  { %s351_s4 = scalar_lea.vmem %s28_s24, 64  ;;  %p356_p12 = scmp.lt.s32.totalorder %s28_s24, %s28_s24 }
  0x1b   :  { %p352_p11 = scmp.ne.s32.totalorder %s28_s24, %s351_s4  ;;  %p357_p13 = scmp.lt.s32.totalorder %s351_s4, %s351_s4 }
  0x1d   :  { %p358_p0 = por %p357_p13, %p356_p12 }
  0x1f   :  { %p359_p1 = pnand %p358_p0, %p352_p11 }
  0x21   :  { %362 = shalt.err (!%p359_p1)
}
  0x22   :  { %s395_s0 = smov 32   ;;  %s396_s5 = smov 2  }
  0x23   :  { %33 = dma.hbm_to_vmem [thread:$0]  %s470_s1, 64, %s28_s24, [#allocation8], %s395_s0, %s395_s0, %s396_s5  }
  0x24   :  { %385 = dma.done.wait [#allocation5], 256  }
  0x25   :  { %386 = vsyncadd [#allocation5], 4294967040 }
  0x26   :  { %387 = dma.done.wait [#allocation8], 64  }
  0x27   :  { %388 = vsyncadd [#allocation8], 4294967232  ;;  %v59_v0 = vlaneseq  ;;  %vm47_vm0 = vcmask 0   ;;  %v397_v1 = vmov 0.0   ;;  %v52_v5 = vld [vmem:[#allocation7] sm:$0x3] }
  0x28   :  { %48 = vst.msk [vmem:[#allocation3] sm:$0x1] %vm47_vm0, %v397_v1  ;;  %49 = vst.msk [vmem:[#allocation3 + $0x1] sm:$0x1] %vm47_vm0, %v397_v1  ;;  %v53_v6 = vld [vmem:[#allocation7 + $0x2] sm:$0x3]  ;;  %v54_v8 = vcvt.s32.f32 %v52_v5 }
  0x29   :  { %v60_v2 = vshrl.u32 %v59_v0, 7  ;;  %v50_v7 = vld [vmem:[#allocation4] sm:$0xff]  ;;  %v55_v9 = vcvt.s32.f32 %v53_v6  ;;  %v51_v11 = vld [vmem:[#allocation4 + $0x8] sm:$0xff]  ;;  %vm233_vm1 = vcmask 1040384   ;;  %v398_v23 = vmov 0   ;;  %s399_s1 = smov [#allocation9]  }
  0x2a   :  { %v70_v10 = vcombine.high %v50_v7, %v50_v7  ;;  %v154_v12 = vcombine.high %v51_v11, %v51_v11  ;;  %311 = vset.pattern.permute.xlu1 %v398_v23  ;;  %312 = vset.pattern.permute.xlu0 %v398_v23  ;;  %vm44_vm2 = vcmask 24576   ;;  %s287_s8 = sshll.u32 %s399_s1, 4  ;;  %s288_s8 = int_to_ptr.vmem [resolvable:$true] %s287_s8 }
  0x2b   :  { %v443_v3 = vsub.s32 0, %v60_v2  ;;  %v65_v4 = vsub.s32 1, %v60_v2  ;;  %45 = vst.msk [vmem:[#allocation2] sm:$0x1] %vm44_vm2, %v397_v1  ;;  %46 = vst.msk [vmem:[#allocation2 + $0x1] sm:$0x1] %vm44_vm2, %v397_v1  ;;  %p368_p3 = scmp.lt.s32.totalorder %s288_s8, %s288_s8 }
  0x2c   :  { %72 = vmatprep.subr.mxu0 %v70_v10  ;;  %156 = vmatprep.subr.mxu1 %v154_v12  ;;  %s363_s9 = scalar_lea.vmem %s288_s8, 32 }
  0x2d   :  { %v62_v13 = vrot.slane %v54_v8, %v443_v3  ;;  %v66_v14 = vrot.slane %v54_v8, %v65_v4  ;;  %v146_v15 = vrot.slane %v55_v9, %v443_v3  ;;  %v150_v16 = vrot.slane %v55_v9, %v65_v4  ;;  %73 = vmatpush1.xpose.msra.mxu0 %v50_v7  ;;  %p364_p2 = scmp.ne.s32.totalorder %s288_s8, %s363_s9  ;;  %p369_p4 = scmp.lt.s32.totalorder %s363_s9, %s363_s9 }
  0x2e   :  { %157 = vmatpush1.xpose.msra.mxu1 %v51_v11 }
  0x2f   :  { %v234_v17 = vsel %vm233_vm1, %v62_v13, 0.0  ;;  %v235_v18 = vsel %vm233_vm1, %v66_v14, 0.0  ;;  %v239_v19 = vsel %vm233_vm1, %v146_v15, 0.0  ;;  %v240_v20 = vsel %vm233_vm1, %v150_v16, 0.0  ;;  %136 = vmatprep.mubr.f32.mxu0 %v66_v14  ;;  %220 = vmatprep.mubr.f32.mxu1 %v150_v16  ;;  %v231_v24 = vld [vmem:[#allocation3] sm:$0x1]  ;;  %p370_p5 = por %p369_p4, %p368_p3 }
  0x30   :  { %v236_v21 = vadd.f32 %v235_v18, %v234_v17  ;;  %137 = vmatmul.mubr.f32.vlgmr.msra.gmra.mrb[0].mxu0 %v62_v13  ;;  %v241_v22 = vadd.f32 %v240_v20, %v239_v19  ;;  %v232_v27 = vld [vmem:[#allocation3 + $0x1] sm:$0x1] }
  0x31   :  { %221 = vmatmul.mubr.f32.vlgmr.msra.gmra.mrb[0].mxu1 %v146_v15  ;;  %p371_p6 = pnand %p370_p5, %p364_p2 }
  0x32   :  { %237 = vadd.xlane.f32.xlu0 %v236_v21  ;;  %v56_v36 = vld [vmem:[#allocation2] sm:$0x1]  ;;  %v57_v37 = vld [vmem:[#allocation2 + $0x1] sm:$0x1] }
  0x36   :  { %242 = vadd.xlane.f32.xlu0 %v241_v22 }
  0xbf   :  { %v238_v25 = vpop.xlane.xlu0 %237 }
  0xc0   :  { %v244_v26 = vadd.f32 %v238_v25, %v231_v24 }
  0xc2   :  { %247 = vst.msk [vmem:[#allocation3] sm:$0x1] %vm47_vm0, %v244_v26 }
  0xc3   :  { %v243_v28 = vpop.xlane.xlu0 %242 }
  0xc4   :  { %v245_v29 = vadd.f32 %v243_v28, %v232_v27 }
  0xc6   :  { %248 = vst.msk [vmem:[#allocation3 + $0x1] sm:$0x1] %vm47_vm0, %v245_v29 }
  0xc9   :  { %v252_v30 = vld [vmem:[#allocation3] sm:$0x1] }
  0xca   :  { %v254_v31 = vadd.f32 1.0, %v252_v30 }
  0xcc   :  { %315 = vrcp.f32 %v254_v31 }
  0xcd   :  { %v253_v32 = vld [vmem:[#allocation3 + $0x1] sm:$0x1] }
  0xce   :  { %v255_v33 = vadd.f32 1.0, %v253_v32 }
  0xd0   :  { %317 = vrcp.f32 %v255_v33 }
  0xd6   :  { %v316_v34 = vpop.eup %315 }
  0xd7   :  { %262 = vperm.xlu1 %311, %v316_v34  }
  0xda   :  { %v318_v35 = vpop.eup %317 }
  0xdb   :  { %271 = vperm.xlu1 %311, %v318_v35  }
 0x103   :  { %v138_v38 = vpop.f32.mrb[0].mxu0 }
 0x104   :  { %v226_v39 = vadd.f32 %v138_v38, %v56_v36  ;;  %v222_v40 = vpop.f32.mrb[0].mxu1  ;;  %v140_v41 = vpop.f32.mrb[1].mxu0 }
 0x105   :  { %v227_v42 = vadd.f32 %v222_v40, %v57_v37  ;;  %v224_v43 = vpop.f32.mrb[1].mxu1 }
 0x106   :  { %229 = vst.msk [vmem:[#allocation2] sm:$0x1] %vm44_vm2, %v226_v39 }
 0x107   :  { %230 = vst.msk [vmem:[#allocation2 + $0x1] sm:$0x1] %vm44_vm2, %v227_v42 }
 0x10d   :  { %v258_v45 = vld [vmem:[#allocation2] sm:$0x1] }
 0x10e   :  { %v259_v49 = vld [vmem:[#allocation2 + $0x1] sm:$0x1] }
 0x156   :  { %v263_v44 = vpop.permute.xlu1 %262 }
 0x157   :  { %v268_v46 = vrot.slane %v263_v44, %v443_v3 }
 0x159   :  { %v278_v47 = vmul.f32 %v268_v46, %v258_v45 }
 0x15a   :  { %v272_v48 = vpop.permute.xlu1 %271 }
 0x15b   :  { %280 = vst.msk [vmem:[#allocation9] sm:$0x1] %vm44_vm2, %v278_v47  ;;  %v277_v50 = vrot.slane %v272_v48, %v443_v3 }
 0x15d   :  { %v279_v51 = vmul.f32 %v277_v50, %v259_v49 }
 0x15f   :  { %281 = vst.msk [vmem:[#allocation9 + $0x1] sm:$0x1] %vm44_vm2, %v279_v51 }
 0x160   :  { %374 = shalt.err (!%p371_p6)
}
 0x161   :  { %s375_s12 = scalar_lea.hbm %s471_s2, 32 }
 0x162   :  { %p376_p7 = scmp.ne.s32.totalorder %s471_s2, %s375_s12  ;;  %p379_p8 = scmp.lt.u32.totalorder %s375_s12, %s471_s2 }
 0x164   :  { %p381_p9 = pnand %p379_p8, %p376_p7 }
 0x166   :  { %384 = shalt.err (!%p381_p9)
}
 0x167   :  { %s400_s17 = smov 16   ;;  %s401_s18 = smov 1  }
 0x168   :  { %293 = dma.vmem_to_hbm [thread:$0]  %s288_s8, 32, %s471_s2, [#allocation6], %s400_s17, %s400_s17, %s401_s18  }
 0x169   :  { %389 = dma.done.wait [#allocation6], 32  }
 0x16a   :  { %390 = vsyncadd [#allocation6], 4294967264 }
 0x16b   :  { %297 = vsyncpa [#allocation5], 1 }
 0x16c   :  { %298 = vsyncpa [#allocation8], 1 }
 0x16d   :  { %299 = vsyncpa [#allocation6], 1 }

</bundles_post_ra>
